<compile_context>
chip_gen: v6e
topology: v6e:2x2x1
jax: 0.10.0
libtpu: 0.0.40
codegen_flags: <defaults>
</compile_context>

<pallas_src>
import jax
import jax.numpy as jnp
from jax.experimental import pallas as pl
from jax.experimental.pallas import tpu as pltpu  # noqa: F401  (kept for TPU backend)

HID = 32          # args.hid_size
ACT_DIM = 8       # args.action_dim
IN_DIM = 16       # input_shape
AGENT_NUM = 4     # args.agent_num
BATCH = 2         # episode batch
LN_EPS = 1e-5     # torch.nn.LayerNorm default eps

# Sublane rows of the packed bias/affine tile.
_B_FC1, _B_GAMMA, _B_BETA, _B_IH, _B_HH, _B_FC2 = 0, 1, 2, 3, 4, 5
_BIAS_ROWS = 8    # padded to a full sublane group


def rnn_agent_kernel(
    x_ref,      # (T, N, IN_DIM)   full input sequence, VMEM-resident
    h0_ref,     # (N, HID)         initial hidden state
    w1_ref,     # (IN_DIM, HID)    fc1 weight (transposed)
    wg_ref,     # (2, HID, 3*HID)  stacked [w_ih; w_hh] (transposed), gates [r|z|n]
    w2_ref,     # (HID, ACT_DIM)   fc2 weight (transposed)
    bias_ref,   # (8, 3*HID)       packed biases / LayerNorm affine rows
    h_out_ref,  # (T, N, HID)      hidden state per step
    a_out_ref,  # (T, N, ACT_DIM)  action logits per step
):
    t_steps, n, in_dim = x_ref.shape
    rows = t_steps * n
    h3 = 3 * HID

    # ---- unpack biases / affine rows ONCE per call ----
    bias = bias_ref[...]
    b1 = bias[_B_FC1:_B_FC1 + 1, :HID]
    gamma = bias[_B_GAMMA:_B_GAMMA + 1, :HID]
    beta = bias[_B_BETA:_B_BETA + 1, :HID]
    b_ih = bias[_B_IH:_B_IH + 1, :]
    b_hh = bias[_B_HH:_B_HH + 1, :]
    b2 = bias[_B_FC2:_B_FC2 + 1, :ACT_DIM]

    # ---- input-dependent path, hoisted out of the recurrence ----
    # fc1 over all T*N rows in one MXU matmul
    x = x_ref[...].reshape(rows, in_dim)
    y = jnp.dot(x, w1_ref[...], preferred_element_type=jnp.float32) + b1

    # LayerNorm (centered variance form — review correctness concern)
    mean = jnp.mean(y, axis=-1, keepdims=True)
    cent = y - mean
    var = jnp.mean(cent * cent, axis=-1, keepdims=True)
    y = cent * jax.lax.rsqrt(var + LN_EPS)
    y = y * gamma + beta

    # hid_activation == 'relu'
    y = jnp.maximum(y, 0.0)

    # gi for ALL steps: one batched (T*N, HID) x (HID, 3*HID) matmul
    gi_all = jnp.dot(y, wg_ref[0], preferred_element_type=jnp.float32) + b_ih
    gi_all = gi_all.reshape(t_steps, n, h3)

    # ---- serial GRU recurrence: only h @ W_hh + elementwise per step ----
    w_hh = wg_ref[1]
    h = h0_ref[...]                       # (N, HID) — lives in vregs
    hs = []
    for t in range(t_steps):              # static unroll (T small & static)
        gi = gi_all[t]
        gh = jnp.dot(h, w_hh, preferred_element_type=jnp.float32) + b_hh
        # r and z share one 64-lane sigmoid; b_hn stays inside the r-scaled term
        # (folded into gh), matching torch.nn.GRUCell.
        rz = jax.nn.sigmoid(gi[:, :2 * HID] + gh[:, :2 * HID])
        r = rz[:, :HID]
        z = rz[:, HID:2 * HID]
        ng = jnp.tanh(gi[:, 2 * HID:] + r * gh[:, 2 * HID:])
        h = (1.0 - z) * ng + z * h
        hs.append(h)

    # ---- single full-block stores + one batched fc2 after the loop ----
    h_all = jnp.stack(hs, axis=0)         # (T, N, HID)
    h_out_ref[...] = h_all

    a_all = jnp.dot(h_all.reshape(rows, HID), w2_ref[...],
                    preferred_element_type=jnp.float32) + b2
    a_out_ref[...] = a_all.reshape(t_steps, n, ACT_DIM)


def _pack_params(params):
    """Pack 12 logical parameters into 4 kernel arguments."""
    h3 = 3 * HID
    bias = jnp.zeros((_BIAS_ROWS, h3), jnp.float32)
    bias = bias.at[_B_FC1, :HID].set(params["b1"].reshape(-1))
    bias = bias.at[_B_GAMMA, :HID].set(params["ln_gamma"].reshape(-1))
    bias = bias.at[_B_BETA, :HID].set(params["ln_beta"].reshape(-1))
    bias = bias.at[_B_IH, :].set(params["b_ih"].reshape(-1))
    bias = bias.at[_B_HH, :].set(params["b_hh"].reshape(-1))
    bias = bias.at[_B_FC2, :ACT_DIM].set(params["b2"].reshape(-1))
    w_gru = jnp.stack([params["w_ih"], params["w_hh"]], axis=0)  # (2, HID, 3*HID)
    return params["w1"], w_gru, params["w2"], bias


def rnn_agent_rollout(inputs_seq, hidden_state, params):
    """Run T GRU-agent steps in ONE pallas_call (no grid, loop internalized).

    inputs_seq: (T, N, IN_DIM); hidden_state: (..., HID) reshaped to (N, HID).
    Returns (a_seq (T, N, ACT_DIM), h_seq (T, N, HID)).
    """
    t_steps, n, _ = inputs_seq.shape
    h0 = hidden_state.reshape(-1, HID).astype(jnp.float32)
    w1, w_gru, w2, bias = _pack_params(params)

    h_seq, a_seq = pl.pallas_call(
        rnn_agent_kernel,
        out_shape=(
            jax.ShapeDtypeStruct((t_steps, n, HID), jnp.float32),
            jax.ShapeDtypeStruct((t_steps, n, ACT_DIM), jnp.float32),
        ),
        # No grid / BlockSpecs: every operand is a single full VMEM-resident block
        # (working set is ~tens of KiB), so there is exactly one DMA per argument
        # and one writeback per output for the whole rollout.
    )(inputs_seq.astype(jnp.float32), h0, w1, w_gru, w2, bias)

    return a_seq, h_seq


def rnn_agent_forward(inputs, hidden_state, params):
    """Single-step forward matching RNNAgent.forward: returns (a, None, h)."""
    a_seq, h_seq = rnn_agent_rollout(inputs[None], hidden_state, params)
    return a_seq[0], None, h_seq[0]


def rnn_agent_reference(inputs_seq, hidden_state, params):
    """Pure-JAX reference (mirrors PyTorch forward applied T times)."""
    h = hidden_state.reshape(-1, HID)
    a_list, h_list = [], []
    for t in range(inputs_seq.shape[0]):
        x = inputs_seq[t]
        y = x @ params["w1"] + params["b1"]
        mean = y.mean(-1, keepdims=True)
        var = ((y - mean) ** 2).mean(-1, keepdims=True)
        y = (y - mean) / jnp.sqrt(var + LN_EPS)
        y = y * params["ln_gamma"] + params["ln_beta"]
        y = jnp.maximum(y, 0.0)
        gi = y @ params["w_ih"] + params["b_ih"]
        gh = h @ params["w_hh"] + params["b_hh"]
        r = jax.nn.sigmoid(gi[:, :HID] + gh[:, :HID])
        z = jax.nn.sigmoid(gi[:, HID:2 * HID] + gh[:, HID:2 * HID])
        n = jnp.tanh(gi[:, 2 * HID:] + r * gh[:, 2 * HID:])
        h = (1.0 - z) * n + z * h
        a = h @ params["w2"] + params["b2"]
        a_list.append(a)
        h_list.append(h)
    return jnp.stack(a_list), jnp.stack(h_list)


def init_params(key):
    ks = jax.random.split(key, 10)
    scale = 0.1
    params = {
        # fc1: torch weight (HID, IN_DIM) -> stored transposed (IN_DIM, HID)
        "w1": scale * jax.random.normal(ks[0], (IN_DIM, HID), jnp.float32),
        "b1": scale * jax.random.normal(ks[1], (1, HID), jnp.float32),
        # LayerNorm affine params
        "ln_gamma": 1.0 + scale * jax.random.normal(ks[2], (1, HID), jnp.float32),
        "ln_beta": scale * jax.random.normal(ks[3], (1, HID), jnp.float32),
        # GRUCell: torch weight_ih (3*HID, HID) -> transposed (HID, 3*HID), order [r|z|n]
        "w_ih": scale * jax.random.normal(ks[4], (HID, 3 * HID), jnp.float32),
        "w_hh": scale * jax.random.normal(ks[5], (HID, 3 * HID), jnp.float32),
        "b_ih": scale * jax.random.normal(ks[6], (1, 3 * HID), jnp.float32),
        "b_hh": scale * jax.random.normal(ks[7], (1, 3 * HID), jnp.float32),
        # fc2: torch weight (ACT_DIM, HID) -> transposed (HID, ACT_DIM)
        "w2": scale * jax.random.normal(ks[8], (HID, ACT_DIM), jnp.float32),
        "b2": scale * jax.random.normal(ks[9], (1, ACT_DIM), jnp.float32),
    }
    return params


def init_hidden():
    # mirrors RNNAgent.init_hidden(): zeros of shape (1, agent_num, hid_size)
    return jnp.zeros((1, AGENT_NUM, HID), jnp.float32)


if __name__ == "__main__":
    key = jax.random.PRNGKey(0)
    k_in, k_seq, k_p = jax.random.split(key, 3)

    params = init_params(k_p)

    n = BATCH * AGENT_NUM
    hidden_state = jnp.tile(init_hidden(), (BATCH, 1, 1))   # zeros, (BATCH, AGENT_NUM, HID)

    # ---- single step (matches the PyTorch module forward; T == 1, one launch) ----
    inputs = jax.random.normal(k_in, (n, IN_DIM), jnp.float32)
    a, _, h = rnn_agent_forward(inputs, hidden_state, params)
    jax.block_until_ready((a, h))
    assert a.shape == (n, ACT_DIM) and h.shape == (n, HID)

    # ---- multi-step rollout: T steps in ONE pallas_call, weights resident ----
    T = 6
    x_seq = jax.random.normal(k_seq, (T, n, IN_DIM), jnp.float32)
    a_seq, h_seq = rnn_agent_rollout(x_seq, hidden_state, params)
    jax.block_until_ready((a_seq, h_seq))
    assert a_seq.shape == (T, n, ACT_DIM) and h_seq.shape == (T, n, HID)

    # ---- correctness check vs pure-JAX reference (loose tol for MXU precision) ----
    a1_ref, h1_ref = rnn_agent_reference(inputs[None], hidden_state, params)
    assert jnp.allclose(a, a1_ref[0], atol=1e-2, rtol=1e-2)
    assert jnp.allclose(h, h1_ref[0], atol=1e-2, rtol=1e-2)
    a_ref, h_ref = rnn_agent_reference(x_seq, hidden_state, params)
    assert jnp.allclose(a_seq, a_ref, atol=1e-2, rtol=1e-2)
    assert jnp.allclose(h_seq, h_ref, atol=1e-2, rtol=1e-2)

    print("KERNEL_OK")
</pallas_src>

<mosaic_0001>
module attributes {stable_mosaic.version = 11 : i64} {
  func.func @rnn_agent_kernel(%arg0: memref<1x8x16xf32, #tpu.memory_space<vmem>>, %arg1: memref<8x32xf32, #tpu.memory_space<vmem>>, %arg2: memref<16x32xf32, #tpu.memory_space<vmem>>, %arg3: memref<2x32x96xf32, #tpu.memory_space<vmem>>, %arg4: memref<32x8xf32, #tpu.memory_space<vmem>>, %arg5: memref<8x96xf32, #tpu.memory_space<vmem>>, %arg6: memref<1x8x32xf32, #tpu.memory_space<vmem>>, %arg7: memref<1x8x8xf32, #tpu.memory_space<vmem>>) attributes {dimension_semantics = [], scalar_prefetch = 0 : i64, scratch_operands = 0 : i64, tpu.core_type = #tpu.core_type<tc>} {
    %c0 = arith.constant 0 : index
    %c0_0 = arith.constant 0 : index
    %0 = vector.load %arg5[%c0, %c0_0] : memref<8x96xf32, #tpu.memory_space<vmem>>, vector<8x96xf32>
    %1 = vector.extract_strided_slice %0 {offsets = [0, 0], sizes = [1, 32], strides = [1, 1]} : vector<8x96xf32> to vector<1x32xf32>
    %2 = vector.extract_strided_slice %0 {offsets = [1, 0], sizes = [1, 32], strides = [1, 1]} : vector<8x96xf32> to vector<1x32xf32>
    %3 = vector.extract_strided_slice %0 {offsets = [2, 0], sizes = [1, 32], strides = [1, 1]} : vector<8x96xf32> to vector<1x32xf32>
    %4 = vector.extract_strided_slice %0 {offsets = [3, 0], sizes = [1, 96], strides = [1, 1]} : vector<8x96xf32> to vector<1x96xf32>
    %5 = vector.extract_strided_slice %0 {offsets = [4, 0], sizes = [1, 96], strides = [1, 1]} : vector<8x96xf32> to vector<1x96xf32>
    %6 = vector.extract_strided_slice %0 {offsets = [5, 0], sizes = [1, 8], strides = [1, 1]} : vector<8x96xf32> to vector<1x8xf32>
    %c0_1 = arith.constant 0 : index
    %c0_2 = arith.constant 0 : index
    %c0_3 = arith.constant 0 : index
    %7 = vector.load %arg0[%c0_1, %c0_2, %c0_3] : memref<1x8x16xf32, #tpu.memory_space<vmem>>, vector<1x8x16xf32>
    %8 = vector.shape_cast %7 : vector<1x8x16xf32> to vector<8x16xf32>
    %c0_4 = arith.constant 0 : index
    %c0_5 = arith.constant 0 : index
    %9 = vector.load %arg2[%c0_4, %c0_5] : memref<16x32xf32, #tpu.memory_space<vmem>>, vector<16x32xf32>
    %cst = arith.constant dense<0.000000e+00> : vector<8x32xf32>
    %10 = tpu.matmul %8, %9, %cst {dimension_numbers = #tpu.dot_dimension_numbers<[1], [0], [0], [1], [0, 0, 1, 1], [], []>} : vector<8x16xf32>, vector<16x32xf32>, vector<8x32xf32> -> vector<8x32xf32>
    %11 = vector.broadcast %1 : vector<1x32xf32> to vector<8x32xf32>
    %12 = arith.addf %10, %11 : vector<8x32xf32>
    %cst_6 = arith.constant dense<0.000000e+00> : vector<8xf32>
    %13 = vector.multi_reduction <add>, %12, %cst_6 [1] : vector<8x32xf32> to vector<8xf32>
    %14 = vector.shape_cast %13 : vector<8xf32> to vector<8x1xf32>
    %cst_7 = arith.constant 3.200000e+01 : f32
    %15 = vector.broadcast %cst_7 : f32 to vector<8x1xf32>
    %16 = arith.divf %14, %15 : vector<8x1xf32>
    %17 = vector.broadcast %16 : vector<8x1xf32> to vector<8x32xf32>
    %18 = arith.subf %12, %17 : vector<8x32xf32>
    %19 = arith.mulf %18, %18 : vector<8x32xf32>
    %cst_8 = arith.constant dense<0.000000e+00> : vector<8xf32>
    %20 = vector.multi_reduction <add>, %19, %cst_8 [1] : vector<8x32xf32> to vector<8xf32>
    %21 = vector.shape_cast %20 : vector<8xf32> to vector<8x1xf32>
    %cst_9 = arith.constant 3.200000e+01 : f32
    %22 = vector.broadcast %cst_9 : f32 to vector<8x1xf32>
    %23 = arith.divf %21, %22 : vector<8x1xf32>
    %cst_10 = arith.constant 9.99999974E-6 : f32
    %24 = vector.broadcast %cst_10 : f32 to vector<8x1xf32>
    %25 = arith.addf %23, %24 : vector<8x1xf32>
    %26 = math.rsqrt %25 : vector<8x1xf32>
    %27 = vector.broadcast %26 : vector<8x1xf32> to vector<8x32xf32>
    %28 = arith.mulf %18, %27 : vector<8x32xf32>
    %29 = vector.broadcast %2 : vector<1x32xf32> to vector<8x32xf32>
    %30 = arith.mulf %28, %29 : vector<8x32xf32>
    %31 = vector.broadcast %3 : vector<1x32xf32> to vector<8x32xf32>
    %32 = arith.addf %30, %31 : vector<8x32xf32>
    %cst_11 = arith.constant 0.000000e+00 : f32
    %33 = vector.broadcast %cst_11 : f32 to vector<8x32xf32>
    %34 = arith.maximumf %32, %33 : vector<8x32xf32>
    %c0_12 = arith.constant 0 : index
    %c0_13 = arith.constant 0 : index
    %c0_14 = arith.constant 0 : index
    %35 = vector.load %arg3[%c0_12, %c0_13, %c0_14] : memref<2x32x96xf32, #tpu.memory_space<vmem>>, vector<1x32x96xf32>
    %36 = vector.shape_cast %35 : vector<1x32x96xf32> to vector<32x96xf32>
    %cst_15 = arith.constant dense<0.000000e+00> : vector<8x96xf32>
    %37 = tpu.matmul %34, %36, %cst_15 {dimension_numbers = #tpu.dot_dimension_numbers<[1], [0], [0], [1], [0, 0, 1, 1], [], []>} : vector<8x32xf32>, vector<32x96xf32>, vector<8x96xf32> -> vector<8x96xf32>
    %38 = vector.broadcast %4 : vector<1x96xf32> to vector<8x96xf32>
    %39 = arith.addf %37, %38 : vector<8x96xf32>
    %40 = vector.shape_cast %39 : vector<8x96xf32> to vector<1x8x96xf32>
    %c1 = arith.constant 1 : index
    %c0_16 = arith.constant 0 : index
    %c0_17 = arith.constant 0 : index
    %41 = vector.load %arg3[%c1, %c0_16, %c0_17] : memref<2x32x96xf32, #tpu.memory_space<vmem>>, vector<1x32x96xf32>
    %42 = vector.shape_cast %41 : vector<1x32x96xf32> to vector<32x96xf32>
    %c0_18 = arith.constant 0 : index
    %c0_19 = arith.constant 0 : index
    %43 = vector.load %arg1[%c0_18, %c0_19] : memref<8x32xf32, #tpu.memory_space<vmem>>, vector<8x32xf32>
    %44 = vector.shape_cast %40 : vector<1x8x96xf32> to vector<8x96xf32>
    %cst_20 = arith.constant dense<0.000000e+00> : vector<8x96xf32>
    %45 = tpu.matmul %43, %42, %cst_20 {dimension_numbers = #tpu.dot_dimension_numbers<[1], [0], [0], [1], [0, 0, 1, 1], [], []>} : vector<8x32xf32>, vector<32x96xf32>, vector<8x96xf32> -> vector<8x96xf32>
    %46 = vector.broadcast %5 : vector<1x96xf32> to vector<8x96xf32>
    %47 = arith.addf %45, %46 : vector<8x96xf32>
    %48 = vector.extract_strided_slice %44 {offsets = [0, 0], sizes = [8, 64], strides = [1, 1]} : vector<8x96xf32> to vector<8x64xf32>
    %49 = vector.extract_strided_slice %47 {offsets = [0, 0], sizes = [8, 64], strides = [1, 1]} : vector<8x96xf32> to vector<8x64xf32>
    %50 = arith.addf %48, %49 : vector<8x64xf32>
    %51 = arith.negf %50 : vector<8x64xf32>
    %52 = math.exp %51 : vector<8x64xf32>
    %cst_21 = arith.constant 1.000000e+00 : f32
    %53 = vector.broadcast %cst_21 : f32 to vector<8x64xf32>
    %54 = arith.addf %53, %52 : vector<8x64xf32>
    %55 = arith.divf %53, %54 : vector<8x64xf32>
    %56 = vector.extract_strided_slice %55 {offsets = [0, 0], sizes = [8, 32], strides = [1, 1]} : vector<8x64xf32> to vector<8x32xf32>
    %57 = vector.extract_strided_slice %55 {offsets = [0, 32], sizes = [8, 32], strides = [1, 1]} : vector<8x64xf32> to vector<8x32xf32>
    %58 = vector.extract_strided_slice %44 {offsets = [0, 64], sizes = [8, 32], strides = [1, 1]} : vector<8x96xf32> to vector<8x32xf32>
    %59 = vector.extract_strided_slice %47 {offsets = [0, 64], sizes = [8, 32], strides = [1, 1]} : vector<8x96xf32> to vector<8x32xf32>
    %60 = arith.mulf %56, %59 : vector<8x32xf32>
    %61 = arith.addf %58, %60 : vector<8x32xf32>
    %62 = math.tanh %61 : vector<8x32xf32>
    %cst_22 = arith.constant 1.000000e+00 : f32
    %63 = vector.broadcast %cst_22 : f32 to vector<8x32xf32>
    %64 = arith.subf %63, %57 : vector<8x32xf32>
    %65 = arith.mulf %64, %62 : vector<8x32xf32>
    %66 = arith.mulf %57, %43 : vector<8x32xf32>
    %67 = arith.addf %65, %66 : vector<8x32xf32>
    %68 = vector.shape_cast %67 : vector<8x32xf32> to vector<1x8x32xf32>
    %c0_23 = arith.constant 0 : index
    %c0_24 = arith.constant 0 : index
    %c0_25 = arith.constant 0 : index
    %69 = vector.load %arg6[%c0_23, %c0_24, %c0_25] : memref<1x8x32xf32, #tpu.memory_space<vmem>>, vector<1x8x32xf32>
    tpu.vector_store %arg6[%c0_23, %c0_24, %c0_25], %68 {strides = array<i32>} : memref<1x8x32xf32, #tpu.memory_space<vmem>>, vector<1x8x32xf32>,
    %70 = vector.shape_cast %68 : vector<1x8x32xf32> to vector<8x32xf32>
    %c0_26 = arith.constant 0 : index
    %c0_27 = arith.constant 0 : index
    %71 = vector.load %arg4[%c0_26, %c0_27] : memref<32x8xf32, #tpu.memory_space<vmem>>, vector<32x8xf32>
    %cst_28 = arith.constant dense<0.000000e+00> : vector<8x8xf32>
    %72 = tpu.matmul %70, %71, %cst_28 {dimension_numbers = #tpu.dot_dimension_numbers<[1], [0], [0], [1], [0, 0, 1, 1], [], []>} : vector<8x32xf32>, vector<32x8xf32>, vector<8x8xf32> -> vector<8x8xf32>
    %73 = vector.broadcast %6 : vector<1x8xf32> to vector<8x8xf32>
    %74 = arith.addf %72, %73 : vector<8x8xf32>
    %75 = vector.shape_cast %74 : vector<8x8xf32> to vector<1x8x8xf32>
    %c0_29 = arith.constant 0 : index
    %c0_30 = arith.constant 0 : index
    %c0_31 = arith.constant 0 : index
    %76 = vector.load %arg7[%c0_29, %c0_30, %c0_31] : memref<1x8x8xf32, #tpu.memory_space<vmem>>, vector<1x8x8xf32>
    tpu.vector_store %arg7[%c0_29, %c0_30, %c0_31], %75 {strides = array<i32>} : memref<1x8x8xf32, #tpu.memory_space<vmem>>, vector<1x8x8xf32>,
    return
  }
}

</mosaic_0001>

<bundles_post_ra>
// kernel: tpu_custom_call.1
= control target key start
LH: loop header
LB: loop body
LE: loop exit
PB: predicated region body
PF: predicated region fallthrough
CT: control target
= control target key end

     0   :  { %13 = vsyncpa [#allocation3], 0  ;;  %s737_s0 = inlined_call_operand.vmem [shape: f32[1,8,16], index: 0, kind: input, shape index: {}]   ;;  %s738_s1 = inlined_call_operand.vmem [shape: f32[8,32], index: 1, kind: input, shape index: {}]   ;;  %s739_s2 = inlined_call_operand.vmem [shape: f32[16,32], index: 2, kind: input, shape index: {}]   ;;  %s740_s3 = inlined_call_operand.hbm [shape: f32[2,32,96], index: 3, kind: input, shape index: {}]   ;;  %s741_s4 = inlined_call_operand.vmem [shape: f32[32,8], index: 4, kind: input, shape index: {}]   ;;  %s742_s5 = inlined_call_operand.vmem [shape: f32[8,96], index: 5, kind: input, shape index: {}]   ;;  %s743_s6 = inlined_call_operand.hbm [shape: f32[1,8,32], index: 6, kind: output, shape index: {0}]   ;;  %s744_s7 = inlined_call_operand.hbm [shape: f32[1,8,8], index: 7, kind: output, shape index: {1}]  }
   0x1   :  { %14 = vsyncpa [#allocation4], 0 }
   0x2   :  { %15 = vsyncpa [#allocation7], 0  ;;  %s605_s24 = smov [#allocation2]  }
   0x3   :  { %s27_s25 = sshll.u32 %s605_s24, 4  ;;  %s28_s25 = int_to_ptr.vmem [resolvable:$true] %s27_s25 }
   0x4   :  { %s547_s26 = scalar_lea.vmem %s28_s25, 1024  ;;  %p552_p1 = scmp.lt.s32.totalorder %s28_s25, %s28_s25 }
   0x5   :  { %p548_p0 = scmp.ne.s32.totalorder %s28_s25, %s547_s26  ;;  %p553_p2 = scmp.lt.s32.totalorder %s547_s26, %s547_s26 }
   0x7   :  { %p554_p3 = por %p553_p2, %p552_p1 }
   0x9   :  { %p555_p4 = pnand %p554_p3, %p548_p0 }
   0xb   :  { %558 = shalt.err (!%p555_p4)
}
   0xc   :  { %s606_s27 = smov 128   ;;  %s607_s28 = smov 8  }
   0xd   :  { %33 = dma.hbm_to_vmem [thread:$0]  %s740_s3, 1024, %s28_s25, [#allocation3], %s606_s27, %s606_s27, %s607_s28  }
   0xe   :  { %599 = dma.done.wait [#allocation3], 1024  }
   0xf   :  { %600 = vsyncadd [#allocation3], 4294966272  ;;  %v608_v0 = vmov 0.0   ;;  %vm609_vm0 = vmmov 0   ;;  %v44_v1 = vld [vmem:[%s739_s2 + $0x8] sm:$0xff]  ;;  %v43_v2 = vld [vmem:[%s739_s2] sm:$0xff]  ;;  %v45_v4 = vlaneseq }
  0x10   :  { %481 = vmatprep.subr.mxu0 %v608_v0  ;;  %485 = vmatprep.mubr.msk.f32.mxu0 %vm609_vm0, %v608_v0  ;;  %v42_v3 = vld [vmem:[%s737_s0] sm:$0xff]  ;;  %vm49_vm1 = vcmask 130048   ;;  %vm123_vm2 = vcmask 261120   ;;  %v234_v13 = vld [vmem:[#allocation2 + $0x38] sm:$0xff]  ;;  %v233_v14 = vld [vmem:[#allocation2 + $0x30] sm:$0xff]  ;;  %s611_s14 = smov 32  }
  0x11   :  { %488 = vmatprep.subr.mxu1 %v608_v0  ;;  %496 = vmatprep.mubr.msk.f32.mxu1 %vm609_vm0, %v608_v0  ;;  %v677_v5 = vshrl.u32 %v45_v4, 7  ;;  %v683_v7 = vld [vmem:[%s742_s5] sm:$0xff]  ;;  %v232_v15 = vld [vmem:[#allocation2 + $0x28] sm:$0xff]  ;;  %v152_v23 = vld [vmem:[#allocation2 + $0x18] sm:$0xff]  ;;  %s612_s23 = smov 96  }
  0x12   :  { %482 = vmatpush3.msra.mxu0 %v44_v1  ;;  %v231_v16 = vld [vmem:[#allocation2 + $0x20] sm:$0xff]  ;;  %v151_v24 = vld [vmem:[#allocation2 + $0x10] sm:$0xff]  ;;  %489 = vmatpush3.msra.mxu1 %v152_v23  ;;  %v150_v25 = vld [vmem:[#allocation2 + $0x8] sm:$0xff] }
  0x13   :  { %483 = vmatprep.subr.mxu0 %v608_v0  ;;  %v47_v6 = vsub.s32 0, %v677_v5  ;;  %v235_v17 = vld [vmem:[%s738_s1] sm:$0xff]  ;;  %490 = vmatprep.subr.mxu1 %v608_v0  ;;  %v238_v27 = vsub.s32 4, %v677_v5  ;;  %s610_s1 = smov 64   ;;  %v140_v35 = vsub.s32 1, %v677_v5  ;;  %v145_v36 = vsub.s32 2, %v677_v5 }
  0x14   :  { %484 = vmatpush3.msra.mxu0 %v43_v2  ;;  %491 = vmatpush3.msra.mxu1 %v151_v24  ;;  %v149_v26 = vld [vmem:[#allocation2] sm:$0xff]  ;;  %v155_v44 = vsub.s32 3, %v677_v5  ;;  %v350_v58 = vld [vmem:[%s741_s4 + $0x18] sm:$0xff]  ;;  %v349_v59 = vld [vmem:[%s741_s4 + $0x10] sm:$0xff] }
  0x15   :  { %486 = vmatmul.mubr.msk.f32.vlgmr.msra.gmra.mxu0 %vm49_vm1, %v42_v3  ;;  %499 = vmatprep.subr.mxu0 %v608_v0  ;;  %v48_v8 = vrot.slane %v683_v7, %v47_v6  ;;  %v239_v28 = vrot.slane %v683_v7, %v238_v27  ;;  %v141_v37 = vrot.slane %v683_v7, %v140_v35  ;;  %v348_v60 = vld [vmem:[%s741_s4 + $0x8] sm:$0xff]  ;;  %v347_v61 = vld [vmem:[%s741_s4] sm:$0xff]  ;;  %s613_s4 = smov [#allocation5]  }
  0x16   :  { %507 = vmatprep.mubr.msk.f32.mxu0 %vm609_vm0, %v608_v0  ;;  %500 = vmatpush3.msra.mxu0 %v234_v13  ;;  %v146_v40 = vrot.slane %v683_v7, %v145_v36  ;;  %v156_v45 = vrot.slane %v683_v7, %v155_v44  ;;  %s435_s24 = sshll.u32 %s613_s4, 4  ;;  %s436_s24 = int_to_ptr.vmem [resolvable:$true] %s435_s24 }
  0x17   :  { %501 = vmatprep.subr.mxu0 %v608_v0  ;;  %492 = vmatprep.subr.mxu1 %v608_v0  ;;  %s559_s25 = scalar_lea.vmem %s436_s24, 128  ;;  %p564_p6 = scmp.lt.s32.totalorder %s436_s24, %s436_s24 }
  0x18   :  { %502 = vmatpush3.msra.mxu0 %v233_v14  ;;  %493 = vmatpush3.msra.mxu1 %v150_v25  ;;  %p560_p5 = scmp.ne.s32.totalorder %s436_s24, %s559_s25  ;;  %p565_p7 = scmp.lt.s32.totalorder %s559_s25, %s559_s25 }
  0x19   :  { %503 = vmatprep.subr.mxu0 %v608_v0  ;;  %494 = vmatprep.subr.mxu1 %v608_v0 }
  0x1a   :  { %504 = vmatpush3.msra.mxu0 %v232_v15  ;;  %495 = vmatpush3.msra.mxu1 %v149_v26  ;;  %p566_p8 = por %p565_p7, %p564_p6 }
  0x1b   :  { %505 = vmatprep.subr.mxu0 %v608_v0  ;;  %510 = vmatprep.subr.mxu1 %v608_v0 }
  0x1c   :  { %506 = vmatpush3.msra.mxu0 %v231_v16  ;;  %p567_p9 = pnand %p566_p8, %p560_p5 }
  0x1d   :  { %508 = vmatmul.mubr.msk.f32.vlgmr.msra.gmra.mxu0 %vm123_vm2, %v235_v17 }
  0xd5   :  { %v119_v9 = vpop.f32.mrf.mxu0 }
  0xd6   :  { %v120_v10 = vadd.f32 %v119_v9, %v48_v8 }
  0xd7   :  { %v487_v11 = vpop.f32.mrf.mxu0 }
  0xd8   :  { %v124_v12 = vsel %vm123_vm2, %v120_v10, 0.0 }
  0xd9   :  { %125 = vadd.xlane.f32.xlu0 %v124_v12 }
  0xdd   :  { %v309_v29 = vpop.f32.mrf.mxu0 }
  0xde   :  { %v310_v30 = vadd.f32 %v309_v29, %v239_v28 }
  0xdf   :  { %v509_v31 = vpop.f32.mrf.mxu0 }
  0xe0   :  { %321 = vrot.lane.b32.xlu1 %v310_v30, %s610_s1 }
 0x152   :  { %v322_v53 = vpop.permute.xlu1 %321 }
 0x162   :  { %v126_v18 = vpop.xlane.xlu0 %125 }
 0x163   :  { %v128_v19 = vmul.f32 0.03125, %v126_v18 }
 0x165   :  { %v129_v20 = vsub.f32 %v120_v10, %v128_v19 }
 0x167   :  { %v130_v21 = vmul.f32 %v129_v20, %v129_v20 }
 0x169   :  { %v131_v22 = vsel %vm123_vm2, %v130_v21, 0.0 }
 0x16a   :  { %132 = vadd.xlane.f32.xlu0 %v131_v22 }
 0x1f3   :  { %v133_v32 = vpop.xlane.xlu0 %132 }
 0x1f4   :  { %v134_v33 = vmul.f32 0.03125, %v133_v32 }
 0x1f6   :  { %v135_v34 = vadd.f32 1e-05, %v134_v33 }
 0x1f8   :  { %531 = vrsqrt.f32 %v135_v34 }
 0x205   :  { %v532_v38 = vpop.eup %531 }
 0x206   :  { %v137_v39 = vmul.f32 %v532_v38, %v129_v20 }
 0x208   :  { %v142_v41 = vmul.f32 %v141_v37, %v137_v39 }
 0x20a   :  { %v147_v42 = vadd.f32 %v146_v40, %v142_v41 }
 0x20c   :  { %v148_v43 = vmax.f32 %v147_v42, 0.0 }
 0x20e   :  { %497 = vmatmul.mubr.msk.f32.vlgmr.msra.gmra.mxu1 %vm123_vm2, %v148_v43 }
 0x20f   :  { %518 = vmatprep.mubr.msk.f32.mxu1 %vm609_vm0, %v608_v0  ;;  %511 = vmatpush3.msra.mxu1 %v350_v58 }
 0x210   :  { %512 = vmatprep.subr.mxu1 %v608_v0 }
 0x211   :  { %513 = vmatpush3.msra.mxu1 %v349_v59 }
 0x212   :  { %514 = vmatprep.subr.mxu1 %v608_v0 }
 0x213   :  { %515 = vmatpush3.msra.mxu1 %v348_v60 }
 0x214   :  { %516 = vmatprep.subr.mxu1 %v608_v0 }
 0x215   :  { %517 = vmatpush3.msra.mxu1 %v347_v61 }
 0x2ce   :  { %v226_v46 = vpop.f32.mrf.mxu1 }
 0x2cf   :  { %v227_v47 = vadd.f32 %v226_v46, %v156_v45 }
 0x2d0   :  { %v498_v48 = vpop.f32.mrf.mxu1 }
 0x2d1   :  { %v313_v49 = vadd.f32 %v310_v30, %v227_v47 }
 0x2d3   :  { %v461_v50 = vmul.f32 -1.442695, %v313_v49 }
 0x2d5   :  { %533 = vpow2.f32 %v461_v50 }
 0x2e2   :  { %v534_v51 = vpop.eup %533 }
 0x2e3   :  { %v317_v52 = vadd.f32 1.0, %v534_v51 }
 0x2e5   :  { %535 = vrcp.f32 %v317_v52 }
 0x2f2   :  { %v536_v54 = vpop.eup %535 }
 0x2f3   :  { %v324_v55 = vmul.f32 %v536_v54, %v322_v53  ;;  %v331_v1 = vsub.f32 1.0, %v536_v54 }
 0x2f5   :  { %326 = vrot.lane.b32.xlu1 %v324_v55, %s610_s1 }
 0x2f9   :  { %337 = vrot.lane.b32.xlu1 %v235_v17, %s611_s14 }
 0x367   :  { %v327_v56 = vpop.permute.xlu1 %326 }
 0x368   :  { %v329_v57 = vadd.f32 %v327_v56, %v227_v47 }
 0x36a   :  { %537 = vtanh.f32 %v329_v57 }
 0x36b   :  { %v338_v63 = vpop.permute.xlu1 %337 }
 0x36c   :  { %v340_v3 = vmul.f32 %v536_v54, %v338_v63 }
 0x377   :  { %v538_v62 = vpop.eup %537 }
 0x378   :  { %333 = vrot.lane.b32.xlu0 %v538_v62, %s612_s23 }
 0x3ea   :  { %v334_v2 = vpop.permute.xlu0 %333 }
 0x3eb   :  { %v336_v4 = vmul.f32 %v334_v2, %v331_v1 }
 0x3ed   :  { %v341_v6 = vadd.f32 %v340_v3, %v336_v4 }
 0x3ef   :  { %343 = vrot.lane.b32.xlu1 %v341_v6, %s612_s23 }
 0x461   :  { %v344_v8 = vpop.permute.xlu1 %343 }
 0x462   :  { %346 = vst.msk [vmem:[#allocation5] sm:$0xff] %vm123_vm2, %v344_v8  ;;  %519 = vmatmul.mubr.msk.f32.vlgmr.msra.gmra.mxu1 %vm123_vm2, %v344_v8 }
 0x463   :  { %570 = shalt.err (!%p567_p9)
}
 0x464   :  { %438 = dma.vmem_to_hbm [thread:$0]  %s436_s24, 128, %s743_s6, [#allocation4]   ;;  %v353_v0 = vsub.s32 5, %v677_v5  ;;  %vm427_vm3 = vcmask 64512  }
 0x465   :  { %s614_s28 = smov [#allocation6]  }
 0x466   :  { %v354_v9 = vrot.slane %v683_v7, %v353_v0  ;;  %s445_s29 = sshll.u32 %s614_s28, 4  ;;  %s446_s29 = int_to_ptr.vmem [resolvable:$true] %s445_s29 }
 0x467   :  { %s579_s30 = scalar_lea.vmem %s446_s29, 128  ;;  %p584_p11 = scmp.lt.s32.totalorder %s446_s29, %s446_s29 }
 0x468   :  { %p580_p10 = scmp.ne.s32.totalorder %s446_s29, %s579_s30  ;;  %p585_p12 = scmp.lt.s32.totalorder %s579_s30, %s579_s30 }
 0x46a   :  { %p586_p13 = por %p585_p12, %p584_p11 }
 0x46c   :  { %p587_p0 = pnand %p586_p13, %p580_p10 }
 0x522   :  { %v423_v10 = vpop.f32.mrf.mxu1 }
 0x523   :  { %v424_v11 = vadd.f32 %v423_v10, %v354_v9 }
 0x524   :  { %v520_v12 = vpop.f32.mrf.mxu1 }
 0x525   :  { %428 = vst.msk [vmem:[#allocation6] sm:$0xff] %vm427_vm3, %v424_v11 }
 0x526   :  { %590 = shalt.err (!%p587_p0)
}
 0x527   :  { %448 = dma.vmem_to_hbm [thread:$0]  %s446_s29, 128, %s744_s7, [#allocation7]  }
 0x528   :  { %601 = dma.done.wait [#allocation4], 128  }
 0x529   :  { %602 = vsyncadd [#allocation4], 4294967168 }
 0x52a   :  { %603 = dma.done.wait [#allocation7], 128  }
 0x52b   :  { %604 = vsyncadd [#allocation7], 4294967168 }
 0x52c   :  { %455 = vsyncpa [#allocation3], 1 }
 0x52d   :  { %456 = vsyncpa [#allocation4], 1 }
 0x52e   :  { %457 = vsyncpa [#allocation7], 1 }

</bundles_post_ra>
